<compile_context>
chip_gen: v5e
topology: v5e:2x2
jax: 0.10.0
libtpu: 0.0.40
codegen_flags: <defaults>
</compile_context>

<pallas_src>
import functools
from typing import NamedTuple, Optional

import jax
import jax.numpy as jnp
from jax.experimental import pallas as pl
from jax.experimental.pallas import tpu as pltpu


def _round_up(x: int, m: int) -> int:
    return (x + m - 1) // m * m


@functools.lru_cache(maxsize=1)
def _tpu_vmem_capacity_bytes() -> int:
    """Physical VMEM per TensorCore (128 MiB on v5e/v6e, 64 MiB on v7x)."""
    try:
        info = pltpu.get_tpu_info()
        cap = int(getattr(info, "vmem_capacity_bytes", 0))
        if cap > 0:
            return cap
    except Exception:
        pass
    return 64 * 1024 * 1024  # conservative fallback (v7x-sized)


@functools.lru_cache(maxsize=1)
def _num_tensorcores() -> int:
    """Best-effort TC count per chip (2 on v7x, 1 on v5e/v6e)."""
    try:
        info = pltpu.get_tpu_info()
        for name in ("num_cores", "tensorcore_count", "core_count"):
            v = getattr(info, name, None)
            if v:
                return int(v)
    except Exception:
        pass
    return 1


def _vmem_limit_bytes() -> int:
    cap = _tpu_vmem_capacity_bytes()
    if cap >= 100 * 1024 * 1024:                   # v5e / v6e (128 MiB physical)
        return 100 * 1024 * 1024
    return min(cap - 8 * 1024 * 1024, 56 * 1024 * 1024)   # v7x (64 MiB physical)


def _default_tm() -> int:
    # Bigger token tile => fewer HBM re-streams of the weights.
    return 512 if _tpu_vmem_capacity_bytes() >= 100 * 1024 * 1024 else 256


def _pick_hidden_tile(hidden_p: int, th: int) -> int:
    """Largest multiple of 128 that divides hidden_p exactly and is <= th."""
    k = hidden_p // 128
    max_blk = max(1, th // 128)
    best = 1
    for d in range(1, max_blk + 1):
        if k % d == 0:
            best = d
    return 128 * best


class RouterWeights(NamedTuple):
    w13: jax.Array   # (in_p, 2*hidden_p), per-block interleaved [W1_j | W3_j]
    b13: jax.Array   # (1, 2*hidden_p), f32, same interleave
    w2: jax.Array    # (hidden_p, out_p)
    b2: jax.Array    # (1, out_p), f32
    th: int          # hidden tile (exact divisor of hidden_p, multiple of 128)
    in_dim: int      # un-padded input dim
    out_dim: int     # un-padded output dim


def prepare_router_weights(w1, b1, w3, b3, w2, b2, *, th: int = 512) -> RouterWeights:
    """Pad + fuse the Router weights ONCE (hoisted out of the per-call path).

    Weights are pre-transposed w.r.t. torch.nn.Linear:
      w1, w3: (in_dim, hidden);  w2: (hidden, out_dim);  biases 1-D.
    """
    in_dim, hidden = w1.shape
    out_dim = w2.shape[1]

    in_p = _round_up(in_dim, 128)
    hidden_p = _round_up(hidden, 128)
    out_p = _round_up(out_dim, 128)
    th_eff = _pick_hidden_tile(hidden_p, th)
    nh = hidden_p // th_eff

    w1_p = jnp.pad(w1, ((0, in_p - in_dim), (0, hidden_p - hidden)))
    w3_p = jnp.pad(w3, ((0, in_p - in_dim), (0, hidden_p - hidden)))
    w2_p = jnp.pad(w2, ((0, hidden_p - hidden), (0, out_p - out_dim)))
    b1_p = jnp.pad(b1.astype(jnp.float32).reshape(1, -1), ((0, 0), (0, hidden_p - hidden)))
    b3_p = jnp.pad(b3.astype(jnp.float32).reshape(1, -1), ((0, 0), (0, hidden_p - hidden)))
    b2_p = jnp.pad(b2.astype(jnp.float32).reshape(1, -1), ((0, 0), (0, out_p - out_dim)))

    # Interleave W1 / W3 per hidden block: within fused block j, columns
    # [0:th) are W1_j and [th:2*th) are W3_j.
    w13 = jnp.concatenate(
        [w1_p.reshape(in_p, nh, 1, th_eff), w3_p.reshape(in_p, nh, 1, th_eff)],
        axis=2,
    ).reshape(in_p, 2 * hidden_p)
    b13 = jnp.concatenate(
        [b1_p.reshape(1, nh, 1, th_eff), b3_p.reshape(1, nh, 1, th_eff)],
        axis=2,
    ).reshape(1, 2 * hidden_p)

    return RouterWeights(w13=w13, b13=b13, w2=w2_p, b2=b2_p,
                         th=th_eff, in_dim=in_dim, out_dim=out_dim)


def _router_kernel(x_ref, w13_ref, b13_ref, w2_ref, b2_ref, o_ref, acc_ref, *, th):
    """One (token-tile i, hidden-tile j) grid step of w2(silu(w1 x) * (w3 x))."""
    j = pl.program_id(1)  # hidden-block index (reduction axis, "arbitrary")

    x = x_ref[...]  # keep native dtype (bf16) -> full-rate MXU

    # Fused first matmul: cols [0:th) = W1 block j, cols [th:2*th) = W3 block j.
    h = jnp.dot(x, w13_ref[...], preferred_element_type=jnp.float32) + b13_ref[...]
    h1 = h[:, :th]
    h3 = h[:, th:]

    # SwiGLU gate in f32 (sigmoid goes to the EUP slot).
    gated = (h1 * jax.nn.sigmoid(h1)) * h3

    contrib = jnp.dot(gated.astype(w2_ref.dtype), w2_ref[...],
                      preferred_element_type=jnp.float32)

    # Direct write on the first hidden step (skips a full f32 zero-fill pass).
    @pl.when(j == 0)
    def _():
        acc_ref[...] = contrib

    @pl.when(j > 0)
    def _():
        acc_ref[...] += contrib

    @pl.when(j == pl.num_programs(1) - 1)
    def _():
        o_ref[...] = (acc_ref[...] + b2_ref[...]).astype(o_ref.dtype)


@functools.partial(jax.jit, static_argnames=("th", "in_dim", "out_dim", "tm"))
def _router_forward_2d(x, w13, b13, w2_p, b2_p, *, th, in_dim, out_dim, tm):
    M = x.shape[0]
    in_p, two_hidden_p = w13.shape
    hidden_p = two_hidden_p // 2
    out_p = w2_p.shape[1]
    nh = hidden_p // th

    # Token tiling: multiples of 16 rows (bf16 packs 16 rows/vreg).  On v7x
    # give the "parallel" axis at least one tile per TensorCore when M allows.
    tm_eff = min(tm, _round_up(M, 16))
    ncores = _num_tensorcores()
    if ncores >= 2 and -(-M // tm_eff) < ncores and M >= 32:
        tm_eff = max(16, _round_up(-(-M // ncores), 16))
    m_pad = _round_up(M, tm_eff)
    n_tok_tiles = m_pad // tm_eff

    x_p = x
    if m_pad != M or in_p != in_dim:
        x_p = jnp.pad(x, ((0, m_pad - M), (0, in_p - in_dim)))

    # ---- advisory cost estimate (weights are re-streamed once per token tile)
    x_isz = jnp.dtype(x.dtype).itemsize
    w_isz = jnp.dtype(w13.dtype).itemsize
    flops = 2 * m_pad * in_p * two_hidden_p + 2 * m_pad * hidden_p * out_p
    transcendentals = m_pad * hidden_p  # sigmoid
    bytes_accessed = (
        m_pad * in_p * x_isz
        + n_tok_tiles * (in_p * two_hidden_p + hidden_p * out_p) * w_isz
        + (two_hidden_p + out_p) * 4
        + m_pad * out_p * x_isz
    )

    out = pl.pallas_call(
        functools.partial(_router_kernel, th=th),
        out_shape=jax.ShapeDtypeStruct((m_pad, out_p), x.dtype),
        grid_spec=pltpu.PrefetchScalarGridSpec(
            num_scalar_prefetch=0,
            grid=(n_tok_tiles, nh),
            in_specs=[
                pl.BlockSpec((tm_eff, in_p), lambda i, j: (i, 0)),      # x tile
                pl.BlockSpec((in_p, 2 * th), lambda i, j: (0, j)),      # [W1|W3] blk j
                pl.BlockSpec((1, 2 * th), lambda i, j: (0, j)),         # [b1|b3] blk j
                pl.BlockSpec((th, out_p), lambda i, j: (j, 0)),         # W2 block j
                pl.BlockSpec((1, out_p), lambda i, j: (0, 0)),          # b2
            ],
            out_specs=pl.BlockSpec((tm_eff, out_p), lambda i, j: (i, 0)),
            scratch_shapes=[pltpu.VMEM((tm_eff, out_p), jnp.float32)],  # accumulator
        ),
        compiler_params=pltpu.CompilerParams(
            dimension_semantics=("parallel", "arbitrary"),
            vmem_limit_bytes=_vmem_limit_bytes(),
        ),
        cost_estimate=pl.CostEstimate(
            flops=flops,
            transcendentals=transcendentals,
            bytes_accessed=bytes_accessed,
        ),
    )(x_p, w13, b13, w2_p, b2_p)

    return out[:M, :out_dim]


def router_forward(x, weights: RouterWeights, *, tm: Optional[int] = None):
    """x: (..., in_dim) -> (..., out_dim). `weights` from prepare_router_weights."""
    if tm is None:
        tm = _default_tm()
    lead = x.shape[:-1]
    x2 = x.reshape(-1, x.shape[-1])
    out = _router_forward_2d(
        x2, weights.w13, weights.b13, weights.w2, weights.b2,
        th=weights.th, in_dim=weights.in_dim, out_dim=weights.out_dim, tm=tm)
    return out.reshape(*lead, weights.out_dim)


def _reference_f32(x, w1, b1, w3, b3, w2, b2):
    x, w1, b1, w3, b3, w2, b2 = (a.astype(jnp.float32) for a in (x, w1, b1, w3, b3, w2, b2))
    h1 = x @ w1 + b1
    h3 = x @ w3 + b3
    return ((h1 * jax.nn.sigmoid(h1)) * h3) @ w2 + b2


if __name__ == "__main__":
    # Small shapes consistent with the module: batch=2, seq=8 -> 16 tokens.
    in_dim, hidden_dim, out_dim = 32, 64, 8
    batch, seq = 2, 8

    key = jax.random.PRNGKey(0)
    kx, k1, k2, k3, kb1, kb2, kb3 = jax.random.split(key, 7)

    dtype = jnp.bfloat16  # bf16 activations/weights, f32 MXU accumulation

    x = jax.random.normal(kx, (batch, seq, in_dim), jnp.float32).astype(dtype)
    # PyTorch Linear stores (out, in); we keep weights pre-transposed (in, out).
    w1 = (jax.random.normal(k1, (in_dim, hidden_dim), jnp.float32) / jnp.sqrt(in_dim)).astype(dtype)
    w3 = (jax.random.normal(k3, (in_dim, hidden_dim), jnp.float32) / jnp.sqrt(in_dim)).astype(dtype)
    w2 = (jax.random.normal(k2, (hidden_dim, out_dim), jnp.float32) / jnp.sqrt(hidden_dim)).astype(dtype)
    # Module inits biases to 0; use nonzero here to exercise the bias path of forward().
    b1 = (jax.random.normal(kb1, (hidden_dim,), jnp.float32) * 0.5).astype(dtype)
    b3 = (jax.random.normal(kb3, (hidden_dim,), jnp.float32) * 0.5).astype(dtype)
    b2 = (jax.random.normal(kb2, (out_dim,), jnp.float32) * 0.5).astype(dtype)

    # One-time weight fusion / padding (hoisted out of the per-call path).
    weights = prepare_router_weights(w1, b1, w3, b3, w2, b2)

    out = router_forward(x, weights)
    out = jax.block_until_ready(out)

    ref = _reference_f32(x.reshape(-1, in_dim), w1, b1, w3, b3, w2, b2).reshape(batch, seq, out_dim)
    assert out.shape == (batch, seq, out_dim)
    err = jnp.max(jnp.abs(out.astype(jnp.float32) - ref))
    assert jnp.allclose(out.astype(jnp.float32), ref, atol=5e-2, rtol=5e-2), (
        f"mismatch vs reference: max abs err = {err}"
    )

    print("KERNEL_OK")
</pallas_src>

<mosaic_0001>
module attributes {stable_mosaic.version = 11 : i64} {
  func.func @_router_kernel(%arg0: i32, %arg1: i32, %arg2: memref<16x128xbf16, #tpu.memory_space<vmem>>, %arg3: memref<128x256xbf16, #tpu.memory_space<vmem>>, %arg4: memref<1x256xf32, #tpu.memory_space<vmem>>, %arg5: memref<128x128xbf16, #tpu.memory_space<vmem>>, %arg6: memref<1x128xf32, #tpu.memory_space<vmem>>, %arg7: memref<16x128xbf16, #tpu.memory_space<vmem>>, %arg8: memref<16x128xf32, #tpu.memory_space<vmem>>) attributes {dimension_semantics = [#tpu.dimension_semantics<parallel>, #tpu.dimension_semantics<arbitrary>], iteration_bounds = array<i64: 1, 1>, scalar_prefetch = 0 : i64, scratch_operands = 1 : i64, tpu.core_type = #tpu.core_type<tc>, window_params = [{transform_indices = @transform_0, window_bounds = array<i64: 16, 128>}, {transform_indices = @transform_1, window_bounds = array<i64: 128, 256>}, {transform_indices = @transform_2, window_bounds = array<i64: 1, 256>}, {transform_indices = @transform_3, window_bounds = array<i64: 128, 128>}, {pipeline_mode = #tpu.pipeline_mode<synchronous>, transform_indices = @transform_4, window_bounds = array<i64: 1, 128>}, {transform_indices = @transform_5, window_bounds = array<i64: 16, 128>}]} {
    %c0 = arith.constant 0 : index
    %c0_0 = arith.constant 0 : index
    %0 = vector.load %arg2[%c0, %c0_0] : memref<16x128xbf16, #tpu.memory_space<vmem>>, vector<16x128xbf16>
    %c0_1 = arith.constant 0 : index
    %c0_2 = arith.constant 0 : index
    %1 = vector.load %arg3[%c0_1, %c0_2] : memref<128x256xbf16, #tpu.memory_space<vmem>>, vector<128x256xbf16>
    %cst = arith.constant dense<0.000000e+00> : vector<16x256xf32>
    %2 = tpu.matmul %0, %1, %cst {dimension_numbers = #tpu.dot_dimension_numbers<[1], [0], [0], [1], [0, 0, 1, 1], [], []>} : vector<16x128xbf16>, vector<128x256xbf16>, vector<16x256xf32> -> vector<16x256xf32>
    %c0_3 = arith.constant 0 : index
    %c0_4 = arith.constant 0 : index
    %3 = vector.load %arg4[%c0_3, %c0_4] : memref<1x256xf32, #tpu.memory_space<vmem>>, vector<1x256xf32>
    %4 = vector.broadcast %3 : vector<1x256xf32> to vector<16x256xf32>
    %5 = arith.addf %2, %4 : vector<16x256xf32>
    %6 = vector.extract_strided_slice %5 {offsets = [0, 0], sizes = [16, 128], strides = [1, 1]} : vector<16x256xf32> to vector<16x128xf32>
    %7 = vector.extract_strided_slice %5 {offsets = [0, 128], sizes = [16, 128], strides = [1, 1]} : vector<16x256xf32> to vector<16x128xf32>
    %8 = arith.negf %6 : vector<16x128xf32>
    %9 = math.exp %8 : vector<16x128xf32>
    %cst_5 = arith.constant 1.000000e+00 : f32
    %10 = vector.broadcast %cst_5 : f32 to vector<16x128xf32>
    %11 = arith.addf %10, %9 : vector<16x128xf32>
    %12 = arith.divf %10, %11 : vector<16x128xf32>
    %13 = arith.mulf %6, %12 : vector<16x128xf32>
    %14 = arith.mulf %13, %7 : vector<16x128xf32>
    %15 = arith.truncf %14 : vector<16x128xf32> to vector<16x128xbf16>
    %c0_6 = arith.constant 0 : index
    %c0_7 = arith.constant 0 : index
    %16 = vector.load %arg5[%c0_6, %c0_7] : memref<128x128xbf16, #tpu.memory_space<vmem>>, vector<128x128xbf16>
    %cst_8 = arith.constant dense<0.000000e+00> : vector<16x128xf32>
    %17 = tpu.matmul %15, %16, %cst_8 {dimension_numbers = #tpu.dot_dimension_numbers<[1], [0], [0], [1], [0, 0, 1, 1], [], []>} : vector<16x128xbf16>, vector<128x128xbf16>, vector<16x128xf32> -> vector<16x128xf32>
    %c0_i32 = arith.constant 0 : i32
    %18 = arith.cmpi eq, %arg1, %c0_i32 : i32
    %19 = arith.extui %18 : i1 to i32
    %c0_i32_9 = arith.constant 0 : i32
    %20 = arith.cmpi ne, %19, %c0_i32_9 : i32
    scf.if %20 {
      %c0_14 = arith.constant 0 : index
      %c0_15 = arith.constant 0 : index
      %27 = vector.load %arg8[%c0_14, %c0_15] : memref<16x128xf32, #tpu.memory_space<vmem>>, vector<16x128xf32>
      tpu.vector_store %arg8[%c0_14, %c0_15], %17 {strides = array<i32>} : memref<16x128xf32, #tpu.memory_space<vmem>>, vector<16x128xf32>,
    } else {
    }
    %c0_i32_10 = arith.constant 0 : i32
    %21 = arith.cmpi sgt, %arg1, %c0_i32_10 : i32
    %22 = arith.extui %21 : i1 to i32
    %c0_i32_11 = arith.constant 0 : i32
    %23 = arith.cmpi ne, %22, %c0_i32_11 : i32
    scf.if %23 {
      %c0_14 = arith.constant 0 : index
      %c0_15 = arith.constant 0 : index
      %27 = vector.load %arg8[%c0_14, %c0_15] : memref<16x128xf32, #tpu.memory_space<vmem>>, vector<16x128xf32>
      %28 = arith.addf %27, %17 : vector<16x128xf32>
      %c0_16 = arith.constant 0 : index
      %c0_17 = arith.constant 0 : index
      %29 = vector.load %arg8[%c0_16, %c0_17] : memref<16x128xf32, #tpu.memory_space<vmem>>, vector<16x128xf32>
      tpu.vector_store %arg8[%c0_16, %c0_17], %28 {strides = array<i32>} : memref<16x128xf32, #tpu.memory_space<vmem>>, vector<16x128xf32>,
    } else {
    }
    %c0_i32_12 = arith.constant 0 : i32
    %24 = arith.cmpi eq, %arg1, %c0_i32_12 : i32
    %25 = arith.extui %24 : i1 to i32
    %c0_i32_13 = arith.constant 0 : i32
    %26 = arith.cmpi ne, %25, %c0_i32_13 : i32
    scf.if %26 {
      %c0_14 = arith.constant 0 : index
      %c0_15 = arith.constant 0 : index
      %27 = vector.load %arg8[%c0_14, %c0_15] : memref<16x128xf32, #tpu.memory_space<vmem>>, vector<16x128xf32>
      %c0_16 = arith.constant 0 : index
      %c0_17 = arith.constant 0 : index
      %28 = vector.load %arg6[%c0_16, %c0_17] : memref<1x128xf32, #tpu.memory_space<vmem>>, vector<1x128xf32>
      %29 = vector.broadcast %28 : vector<1x128xf32> to vector<16x128xf32>
      %30 = arith.addf %27, %29 : vector<16x128xf32>
      %31 = arith.truncf %30 : vector<16x128xf32> to vector<16x128xbf16>
      %c0_18 = arith.constant 0 : index
      %c0_19 = arith.constant 0 : index
      %32 = vector.load %arg7[%c0_18, %c0_19] : memref<16x128xbf16, #tpu.memory_space<vmem>>, vector<16x128xbf16>
      tpu.vector_store %arg7[%c0_18, %c0_19], %31 {strides = array<i32>} : memref<16x128xbf16, #tpu.memory_space<vmem>>, vector<16x128xbf16>,
    } else {
    }
    return
  }
  func.func @transform_0(%arg0: i32, %arg1: i32) -> (i32, i32) {
    %c0_i32 = arith.constant 0 : i32
    %c0_i32_0 = arith.constant 0 : i32
    return %arg0, %c0_i32 : i32, i32
  }
  func.func @transform_1(%arg0: i32, %arg1: i32) -> (i32, i32) {
    %c0_i32 = arith.constant 0 : i32
    %c0_i32_0 = arith.constant 0 : i32
    return %c0_i32, %arg1 : i32, i32
  }
  func.func @transform_2(%arg0: i32, %arg1: i32) -> (i32, i32) {
    %c0_i32 = arith.constant 0 : i32
    %c0_i32_0 = arith.constant 0 : i32
    return %c0_i32, %arg1 : i32, i32
  }
  func.func @transform_3(%arg0: i32, %arg1: i32) -> (i32, i32) {
    %c0_i32 = arith.constant 0 : i32
    %c0_i32_0 = arith.constant 0 : i32
    return %arg1, %c0_i32 : i32, i32
  }
  func.func @transform_4(%arg0: i32, %arg1: i32) -> (i32, i32) {
    %c0_i32 = arith.constant 0 : i32
    %c0_i32_0 = arith.constant 0 : i32
    %c0_i32_1 = arith.constant 0 : i32
    return %c0_i32, %c0_i32_0 : i32, i32
  }
  func.func @transform_5(%arg0: i32, %arg1: i32) -> (i32, i32) {
    %c0_i32 = arith.constant 0 : i32
    %c0_i32_0 = arith.constant 0 : i32
    return %arg0, %c0_i32 : i32, i32
  }
}

</mosaic_0001>

<bundles_post_ra>
// kernel: _router_forward_2d.1
= control target key start
LH: loop header
LB: loop body
LE: loop exit
PB: predicated region body
PF: predicated region fallthrough
CT: control target
= control target key end

     0   :  { %10 = vsyncpa [#allocation4], 0  ;;  %s601_s0 = inlined_call_operand.vmem [shape: bf16[16,128], index: 0, kind: input, shape index: {}]   ;;  %s602_s1 = inlined_call_operand.hbm [shape: bf16[128,256], index: 1, kind: input, shape index: {}]   ;;  %s603_s2 = inlined_call_operand.vmem [shape: f32[1,256], index: 2, kind: input, shape index: {}]   ;;  %s604_s3 = inlined_call_operand.hbm [shape: bf16[128,128], index: 3, kind: input, shape index: {}]   ;;  %s605_s4 = inlined_call_operand.vmem [shape: f32[1,128], index: 4, kind: input, shape index: {}]   ;;  %s606_s5 = inlined_call_operand.vmem [shape: bf16[16,128], index: 5, kind: output, shape index: {}]  }
   0x1   :  { %s18_s20 = sshll.u32 %s602_s1, 4  ;;  %s19_s20 = int_to_ptr.hbm [resolvable:$true] %s18_s20 }
   0x2   :  { %11 = vsyncpa [#allocation6], 0  ;;  %s547_s21 = smov [#allocation3]   ;;  %s33_s25 = sshll.u32 %s604_s3, 4  ;;  %s34_s25 = int_to_ptr.hbm [resolvable:$true] %s33_s25 }
   0x3   :  { %s20_s22 = sshll.u32 %s547_s21, 4  ;;  %s548_s26 = smov 128   ;;  %s21_s22 = int_to_ptr.vmem [resolvable:$true] %s20_s22 }
   0x4   :  { %s549_s27 = smov 8   ;;  %s550_s28 = smov [#allocation5]  }
   0x5   :  { %26 = dma.hbm_to_vmem [thread:$0]  %s19_s20, 2048, %s21_s22, [#allocation4], %s548_s26, %s548_s26, %s549_s27  }
   0x6   :  { %s35_s29 = sshll.u32 %s550_s28, 4  ;;  %s551_s30 = smov 64   ;;  %s36_s29 = int_to_ptr.vmem [resolvable:$true] %s35_s29 }
   0x7   :  { %s552_s6 = smov 4  }
   0x8   :  { %41 = dma.hbm_to_vmem [thread:$0]  %s34_s25, 1024, %s36_s29, [#allocation6], %s551_s30, %s551_s30, %s552_s6  }
   0x9   :  { %543 = dma.done.wait [#allocation4], 2048  }
   0xa   :  { %544 = vsyncadd [#allocation4], 4294965248 }
   0xb   :  { %545 = dma.done.wait [#allocation6], 1024  }
   0xc   :  { %546 = vsyncadd [#allocation6], 4294966272  ;;  %v410_v0 = vld [vmem:[#allocation3 + $0x70] sm:$0xf]  ;;  %v466_v1 = vld [vmem:[#allocation3 + $0x74] sm:$0xf0] }
   0xd   :  { %v402_v2 = vld [vmem:[#allocation3 + $0x60] sm:$0xf]  ;;  %v411_v3 = vor.u32 %v466_v1, %v410_v0  ;;  %v464_v4 = vld [vmem:[#allocation3 + $0x64] sm:$0xf0]  ;;  %v394_v6 = vld [vmem:[#allocation3 + $0x50] sm:$0xf] }
   0xe   :  { %v403_v5 = vor.u32 %v464_v4, %v402_v2  ;;  %v462_v7 = vld [vmem:[#allocation3 + $0x54] sm:$0xf0]  ;;  %v465_v8 = vld [vmem:[#allocation3 + $0x74] sm:$0xf]  ;;  %v412_v9 = vld [vmem:[#allocation3 + $0x78] sm:$0xf0] }
   0xf   :  { %162 = vmatpush.bf16.msra.mxu0 %v411_v3  ;;  %v415_v10 = vor.u32 %v465_v8, %v412_v9  ;;  %v463_v11 = vld [vmem:[#allocation3 + $0x64] sm:$0xf]  ;;  %v404_v12 = vld [vmem:[#allocation3 + $0x68] sm:$0xf0]  ;;  %v395_v13 = vor.u32 %v462_v7, %v394_v6  ;;  %v386_v14 = vld [vmem:[#allocation3 + $0x40] sm:$0xf] }
  0x10   :  { %v407_v15 = vor.u32 %v463_v11, %v404_v12  ;;  %v460_v16 = vld [vmem:[#allocation3 + $0x44] sm:$0xf0]  ;;  %v461_v17 = vld [vmem:[#allocation3 + $0x54] sm:$0xf]  ;;  %v396_v18 = vld [vmem:[#allocation3 + $0x58] sm:$0xf0] }
  0x11   :  { %176 = vmatpush.bf16.msra.mxu1 %v415_v10  ;;  %v387_v19 = vor.u32 %v460_v16, %v386_v14  ;;  %v378_v20 = vld [vmem:[#allocation3 + $0x30] sm:$0xf]  ;;  %v399_v21 = vor.u32 %v461_v17, %v396_v18  ;;  %v458_v22 = vld [vmem:[#allocation3 + $0x34] sm:$0xf0]  ;;  %v459_v23 = vld [vmem:[#allocation3 + $0x44] sm:$0xf] }
  0x12   :  { %v388_v24 = vld [vmem:[#allocation3 + $0x48] sm:$0xf0]  ;;  %v379_v25 = vor.u32 %v458_v22, %v378_v20  ;;  %v370_v26 = vld [vmem:[#allocation3 + $0x20] sm:$0xf]  ;;  %v456_v28 = vld [vmem:[#allocation3 + $0x24] sm:$0xf0] }
  0x13   :  { %163 = vmatpush.bf16.msra.mxu0 %v403_v5  ;;  %v391_v27 = vor.u32 %v459_v23, %v388_v24  ;;  %v457_v29 = vld [vmem:[#allocation3 + $0x34] sm:$0xf]  ;;  %v380_v30 = vld [vmem:[#allocation3 + $0x38] sm:$0xf0]  ;;  %v371_v31 = vor.u32 %v456_v28, %v370_v26  ;;  %v362_v32 = vld [vmem:[#allocation3 + $0x10] sm:$0xf] }
  0x14   :  { %v383_v33 = vor.u32 %v457_v29, %v380_v30  ;;  %v454_v34 = vld [vmem:[#allocation3 + $0x14] sm:$0xf0]  ;;  %v455_v35 = vld [vmem:[#allocation3 + $0x24] sm:$0xf]  ;;  %v372_v36 = vld [vmem:[#allocation3 + $0x28] sm:$0xf0] }
  0x15   :  { %177 = vmatpush.bf16.msra.mxu1 %v407_v15  ;;  %v363_v37 = vor.u32 %v454_v34, %v362_v32  ;;  %v354_v38 = vld [vmem:[#allocation3] sm:$0xf]  ;;  %v375_v39 = vor.u32 %v455_v35, %v372_v36  ;;  %v452_v40 = vld [vmem:[#allocation3 + $0x4] sm:$0xf0]  ;;  %v453_v41 = vld [vmem:[#allocation3 + $0x14] sm:$0xf] }
  0x16   :  { %v364_v42 = vld [vmem:[#allocation3 + $0x18] sm:$0xf0]  ;;  %v355_v43 = vor.u32 %v452_v40, %v354_v38  ;;  %v451_v45 = vld [vmem:[#allocation3 + $0x4] sm:$0xf]  ;;  %v356_v46 = vld [vmem:[#allocation3 + $0x8] sm:$0xf0] }
  0x17   :  { %164 = vmatpush.bf16.msra.mxu0 %v395_v13  ;;  %v367_v44 = vor.u32 %v453_v41, %v364_v42  ;;  %v450_v47 = vld [vmem:[%s601_s0] sm:$0xff]  ;;  %v359_v48 = vor.u32 %v451_v45, %v356_v46  ;;  %v474_v49 = vld [vmem:[#allocation5 + $0x38] sm:$0xff]  ;;  %v473_v50 = vld [vmem:[#allocation5 + $0x30] sm:$0xff] }
  0x18   :  { %297 = vmatpush.bf16.msra.mxu2 %v474_v49  ;;  %v472_v51 = vld [vmem:[#allocation5 + $0x28] sm:$0xff]  ;;  %v471_v52 = vld [vmem:[#allocation5 + $0x20] sm:$0xff]  ;;  %v470_v54 = vld [vmem:[#allocation5 + $0x18] sm:$0xff] }
  0x19   :  { %178 = vmatpush.bf16.msra.mxu1 %v399_v21  ;;  %v70_v53 = vld [vmem:[%s603_s2] sm:$0x3]  ;;  %v469_v57 = vld [vmem:[#allocation5 + $0x10] sm:$0xff]  ;;  %v468_v60 = vld [vmem:[#allocation5 + $0x8] sm:$0xff] }
  0x1a   :  { %v72_v55 = vperm.slane %v70_v53, 0  ;;  %v467_v62 = vld [vmem:[#allocation5] sm:$0xff] }
  0x1b   :  { %165 = vmatpush.bf16.msra.mxu0 %v387_v19  ;;  %v73_v19 = vperm.slane %v70_v53, 1  ;;  %v486_v36 = vld [vmem:[%s605_s4] ss:$0 sm:$0xff] }
  0x1c   :  { %298 = vmatpush.bf16.msra.mxu2 %v473_v50 }
  0x1d   :  { %179 = vmatpush.bf16.msra.mxu1 %v391_v27 }
  0x1f   :  { %166 = vmatpush.bf16.msra.mxu0 %v379_v25 }
  0x20   :  { %299 = vmatpush.bf16.msra.mxu2 %v472_v51 }
  0x21   :  { %180 = vmatpush.bf16.msra.mxu1 %v383_v33 }
  0x23   :  { %167 = vmatpush.bf16.msra.mxu0 %v371_v31 }
  0x24   :  { %300 = vmatpush.bf16.msra.mxu2 %v471_v52 }
  0x25   :  { %181 = vmatpush.bf16.msra.mxu1 %v375_v39 }
  0x27   :  { %168 = vmatpush.bf16.msra.mxu0 %v363_v37 }
  0x28   :  { %301 = vmatpush.bf16.msra.mxu2 %v470_v54 }
  0x29   :  { %182 = vmatpush.bf16.msra.mxu1 %v367_v44 }
  0x2b   :  { %169 = vmatpush.bf16.msra.mxu0 %v355_v43 }
  0x2c   :  { %302 = vmatpush.bf16.msra.mxu2 %v469_v57 }
  0x2d   :  { %183 = vmatpush.bf16.msra.mxu1 %v359_v48 }
  0x2e   :  { %170 = vmatmul.bf16.vlgmr.msra.gmra.mxu0 %v450_v47 }
  0x30   :  { %184 = vmatmul.bf16.vlgmr.msra.gmra.mxu1 %v450_v47  ;;  %303 = vmatpush.bf16.msra.mxu2 %v468_v60 }
  0x34   :  { %304 = vmatpush.bf16.msra.mxu2 %v467_v62 }
  0xab   :  { %v171_v56 = vpop.f32.mrf.mxu0 }
  0xac   :  { %v172_v58 = vadd.f32 %v171_v56, %v72_v55 }
  0xad   :  { %v185_v9 = vpop.f32.mrf.mxu1 }
  0xae   :  { %v416_v59 = vmul.f32 -1.442695, %v172_v58  ;;  %v186_v28 = vadd.f32 %v185_v9, %v73_v19 }
  0xb0   :  { %487 = vpow2.f32 %v416_v59 }
  0xb3   :  { %v173_v61 = vpop.f32.mrf.mxu0 }
  0xb4   :  { %v174_v63 = vadd.f32 %v173_v61, %v72_v55 }
  0xb5   :  { %v187_v25 = vpop.f32.mrf.mxu1 }
  0xb6   :  { %v488_v0 = vpop.eup %487  ;;  %v417_v1 = vmul.f32 -1.442695, %v174_v63  ;;  %v188_v31 = vadd.f32 %v187_v25, %v73_v19 }
  0xb7   :  { %v196_v2 = vadd.f32 1.0, %v488_v0 }
  0xb8   :  { %489 = vpow2.f32 %v417_v1 }
  0xb9   :  { %491 = vrcp.f32 %v196_v2  ;;  %v209_v12 = vand.u32 2147483648, %v196_v2  ;;  %vm203_vm1 = vweird.f32 %v196_v2  ;;  %v207_v13 = vand.u32 2147483647, %v196_v2 }
  0xbb   :  { %v210_v17 = vor.u32 1.1754944e-38, %v209_v12  ;;  %vm208_vm3 = vcmp.eq.f32.partialorder %v207_v13, 8.507059e+37 }
  0xbe   :  { %v490_v3 = vpop.eup %489 }
  0xbf   :  { %v492_v4 = vpop.eup %491  ;;  %v197_v5 = vadd.f32 1.0, %v490_v3 }
  0xc0   :  { %v199_v6 = vmul.f32 %v492_v4, %v196_v2  ;;  %vm204_vm0 = vweird.f32 %v492_v4 }
  0xc1   :  { %493 = vrcp.f32 %v197_v5  ;;  %vm205_vm2 = vmor %vm203_vm1, %vm204_vm0  ;;  %v224_v18 = vand.u32 2147483648, %v197_v5  ;;  %v222_v21 = vand.u32 2147483647, %v197_v5  ;;  %vm218_vm5 = vweird.f32 %v197_v5 }
  0xc2   :  { %v200_v7 = vsub.f32 1.0, %v199_v6 }
  0xc3   :  { %v225_v24 = vor.u32 1.1754944e-38, %v224_v18  ;;  %vm223_vm7 = vcmp.eq.f32.partialorder %v222_v21, 8.507059e+37 }
  0xc4   :  { %v201_v8 = vmul.f32 %v492_v4, %v200_v7 }
  0xc6   :  { %v202_v10 = vadd.f32 %v492_v4, %v201_v8 }
  0xc7   :  { %v494_v11 = vpop.eup %493 }
  0xc8   :  { %v214_v14 = vmul.f32 %v494_v11, %v197_v5  ;;  %v206_v15 = vsel %vm205_vm2, %v492_v4, %v202_v10  ;;  %vm219_vm4 = vweird.f32 %v494_v11 }
  0xc9   :  { %v211_v22 = vsel %vm208_vm3, %v210_v17, %v206_v15  ;;  %vm220_vm6 = vmor %vm218_vm5, %vm219_vm4 }
  0xca   :  { %v215_v16 = vsub.f32 1.0, %v214_v14  ;;  %v228_v26 = vmul.f32 %v211_v22, %v172_v58 }
  0xcc   :  { %v216_v20 = vmul.f32 %v494_v11, %v215_v16  ;;  %v230_v32 = vmul.f32 %v228_v26, %v186_v28 }
  0xce   :  { %v217_v23 = vadd.f32 %v494_v11, %v216_v20 }
  0xd0   :  { %v221_v27 = vsel %vm220_vm6, %v494_v11, %v217_v23 }
  0xd1   :  { %v226_v29 = vsel %vm223_vm7, %v225_v24, %v221_v27 }
  0xd2   :  { %v229_v30 = vmul.f32 %v226_v29, %v174_v63 }
  0xd4   :  { %v231_v33 = vmul.f32 %v229_v30, %v188_v31 }
  0xd6   :  { %v232_v34 = vpack.c.bf16 %v231_v33, %v230_v32 }
  0xd8   :  { %305 = vmatmul.bf16.vlgmr.msra.gmra.mxu2 %v232_v34 }
 0x15b   :  { %v306_v35 = vpop.f32.mrf.mxu2 }
 0x15c   :  { %v336_v38 = vadd.f32 %v486_v36, %v306_v35 }
 0x163   :  { %v308_v37 = vpop.f32.mrf.mxu2 }
 0x164   :  { %v337_v39 = vadd.f32 %v486_v36, %v308_v37 }
 0x166   :  { %v478_v40 = vpack.c.bf16 %v337_v39, %v336_v38 }
 0x168   :  { %479 = vst [vmem:[%s606_s5] sm:$0xff] %v478_v40  }
 0x169   :  { %346 = vsyncpa [#allocation4], 1 }
 0x16a   :  { %347 = vsyncpa [#allocation6], 1 }

</bundles_post_ra>
